<compile_context>
chip_gen: v5e
topology: v5e:2x2
jax: 0.10.0
libtpu: 0.0.40
codegen_flags: <defaults>
</compile_context>

<pallas_src>
import functools

import jax
import jax.numpy as jnp
from jax.experimental import pallas as pl
from jax.experimental.pallas import tpu as pltpu

SELU_ALPHA = 1.6732632423543772848170429916717
SELU_SCALE = 1.0507009873554804934193349852946


def _round_up(x, m):
    return ((x + m - 1) // m) * m


def _vmem_capacity_bytes():
    try:
        return int(pltpu.get_tpu_info().vmem_capacity_bytes)
    except Exception:
        return 64 * 1024 * 1024  # conservative fallback: v7x per-TensorCore VMEM


def _selu_f32(y):
    # SELU: scale * (y if y > 0 else alpha * (exp(y) - 1)); exp -> EUP free slot.
    # (exp(y)-1 kept instead of expm1 for guaranteed Mosaic lowering support.)
    return SELU_SCALE * jnp.where(y > 0.0, y, SELU_ALPHA * (jnp.exp(y) - 1.0))


def _mlp_fused_kernel(x_ref, *refs, layer_num, apply_selu, mid_widths):
    """refs = (w_0..w_{L-1}, b_0..b_{L-1}, o_ref[, h_scratch]).

    x_ref:   (TM, K_pad) bf16 activation tile
    w_l:     (in_pad_l, out_pad_l) bf16, zero-padded, VMEM-resident
    b_l:     (1, out_pad_l) f32, zero-padded
    o_ref:   (TM, N_out_pad) f32
    h_scratch: (TM, max mid width) bf16 anchor for inter-layer activations
    """
    w_refs = refs[:layer_num]
    b_refs = refs[layer_num:2 * layer_num]
    o_ref = refs[2 * layer_num]
    h_scratch = refs[2 * layer_num + 1] if len(refs) > 2 * layer_num + 1 else None

    h = x_ref[...]  # bf16
    for l in range(layer_num):  # static unroll; weights stay resident in VMEM
        y = jnp.dot(h, w_refs[l][...], preferred_element_type=jnp.float32)
        y = y + b_refs[l][...]          # f32 bias add
        if apply_selu:
            y = _selu_f32(y)            # f32 SELU epilogue
        if l < layer_num - 1:
            w = mid_widths[l]
            # Anchor the activation in VMEM (bounds live ranges of the unrolled
            # loop) and hand the next layer a bf16 MXU operand.
            h_scratch[:, :w] = y.astype(jnp.bfloat16)
            h = h_scratch[:, :w]
        else:
            o_ref[...] = y.astype(o_ref.dtype)


def mlp_forward_pallas(x, w_list, b_list, *, apply_selu, out_dim):
    """Fused MLP forward.

    x:      (M, K) float array
    w_list: L weights, layer l padded to (in_pad_l, out_pad_l), bfloat16
    b_list: L biases, layer l shaped (1, out_pad_l), float32
    """
    M, K = x.shape
    L = len(w_list)
    K_pad = int(w_list[0].shape[0])
    N_pad = int(w_list[-1].shape[1])
    assert K <= K_pad

    # Batch tile: multiple of 16 sublanes (clean bf16 packing), capped at 512;
    # when M > 8 aim for >= 2 grid steps so both v7x TensorCores get work.
    TM_CAP = 512
    if M <= 8:
        TM = 8
    else:
        TM = min(TM_CAP, _round_up(pl.cdiv(M, 2), 16))
    M_pad = _round_up(M, TM)
    n_m = M_pad // TM

    # bf16 activation stream, padded only to (M_pad, K_pad).
    x_bf16 = x.astype(jnp.bfloat16)
    if (M_pad, K_pad) != (M, K):
        x_bf16 = jnp.zeros((M_pad, K_pad), jnp.bfloat16).at[:M, :K].set(x_bf16)

    mid_widths = tuple(int(w.shape[1]) for w in w_list[:-1])
    w_mid = max(mid_widths) if mid_widths else 0
    w_max_out = max(int(w.shape[1]) for w in w_list)

    w_bytes = sum(int(w.size) * w.dtype.itemsize for w in w_list)
    b_bytes = sum(int(b.size) * b.dtype.itemsize for b in b_list)

    # VMEM budget: resident weights/biases (single copy), double-buffered
    # activation in/out tiles, the bf16 layer scratch, plus headroom for the
    # compiler's f32 temporaries inside the unrolled layer loop.
    vmem_needed = (
        w_bytes + b_bytes
        + 2 * TM * K_pad * 2
        + 2 * TM * N_pad * 4
        + (TM * w_mid * 2 if L >= 2 else 0)
        + 4 * TM * w_max_out * 4)
    vmem_budget = int(0.85 * _vmem_capacity_bytes())
    assert vmem_needed <= vmem_budget, (
        f"fused MLP kernel needs all weights resident in VMEM: "
        f"{vmem_needed} B > {vmem_budget} B")
    # TODO(synk): add a K/N-tiled multi-pass fallback for MLPs whose weights do
    # not fit in VMEM.
    vmem_limit = int(max(min(vmem_needed + (4 << 20), vmem_budget), 16 << 20))

    kernel = functools.partial(
        _mlp_fused_kernel, layer_num=L, apply_selu=apply_selu,
        mid_widths=mid_widths)

    # Activation tile is pipelined over the batch grid; grid-invariant
    # weights/biases live fully in VMEM (single copy, no double-buffering).
    in_specs = [pl.BlockSpec((TM, K_pad), lambda i: (i, 0))]
    in_specs += [pl.BlockSpec(memory_space=pltpu.MemorySpace.VMEM)] * (2 * L)

    scratch_shapes = []
    if L >= 2:
        scratch_shapes.append(pltpu.VMEM((TM, w_mid), jnp.bfloat16))

    cost = pl.CostEstimate(
        flops=2 * M_pad * sum(int(w.shape[0]) * int(w.shape[1]) for w in w_list),
        transcendentals=(M_pad * sum(int(w.shape[1]) for w in w_list)
                         if apply_selu else 0),
        bytes_accessed=(int(x_bf16.size) * 2 + w_bytes + b_bytes
                        + M_pad * N_pad * 4),
    )

    out = pl.pallas_call(
        kernel,
        out_shape=jax.ShapeDtypeStruct((M_pad, N_pad), jnp.float32),
        grid_spec=pltpu.PrefetchScalarGridSpec(
            num_scalar_prefetch=0,
            grid=(n_m,),
            in_specs=in_specs,
            out_specs=pl.BlockSpec((TM, N_pad), lambda i: (i, 0)),
            scratch_shapes=scratch_shapes,
        ),
        compiler_params=pltpu.CompilerParams(
            dimension_semantics=("parallel",),
            vmem_limit_bytes=vmem_limit,
        ),
        cost_estimate=cost,
    )(x_bf16, *w_list, *b_list)

    return out[:M, :out_dim]


class MLPPallas:
    """JAX/Pallas re-implementation of embedding/Classifier.py::MLP forward."""

    def __init__(self, input_dim, hidden_dim, output_dim, layer_num,
                 bias=True, activate_type='N', key=None):
        self.layer_num = layer_num
        self.activate_type = activate_type
        self.bias = bias
        self.output_dim = output_dim

        if key is None:
            key = jax.random.PRNGKey(0)

        # Layer dims, mirroring the PyTorch module's construction.
        if layer_num == 1:
            dims = [(input_dim, output_dim)]
        else:
            dims = [(input_dim, hidden_dim)]
            dims += [(hidden_dim, hidden_dim)] * (layer_num - 2)
            dims += [(hidden_dim, output_dim)]
        self.dims = dims

        # Deterministic init: mimic PyTorch Linear default U(+-1/sqrt(fan_in)).
        self.weights_f32 = []   # unpadded (in, out) f32, for reference math
        self.biases_f32 = []
        self.w_padded = []      # per-layer (in_pad, out_pad) bf16
        self.b_padded = []      # per-layer (1, out_pad) f32
        for fan_in, fan_out in dims:
            key, wk, bk = jax.random.split(key, 3)
            bound = 1.0 / (float(fan_in) ** 0.5)
            # PyTorch weight shape is (out, in); transpose to (in, out).
            w_pt = jax.random.uniform(wk, (fan_out, fan_in), jnp.float32,
                                      minval=-bound, maxval=bound)
            w = jnp.transpose(w_pt)
            if bias:
                b = jax.random.uniform(bk, (fan_out,), jnp.float32,
                                       minval=-bound, maxval=bound)
            else:
                b = jnp.zeros((fan_out,), jnp.float32)
            self.weights_f32.append(w)
            self.biases_f32.append(b)

            in_pad = _round_up(fan_in, 128)
            out_pad = _round_up(fan_out, 128)
            w_p = jnp.zeros((in_pad, out_pad), jnp.float32
                            ).at[:fan_in, :fan_out].set(w).astype(jnp.bfloat16)
            b_p = jnp.zeros((1, out_pad), jnp.float32).at[0, :fan_out].set(b)
            self.w_padded.append(w_p)
            self.b_padded.append(b_p)

    def __call__(self, x):
        # x: (batch, input_dim) float32
        apply_selu = (self.activate_type == 'N')
        return mlp_forward_pallas(x, self.w_padded, self.b_padded,
                                  apply_selu=apply_selu,
                                  out_dim=self.output_dim)


if __name__ == "__main__":
    key = jax.random.PRNGKey(0)
    key, xk = jax.random.split(key)

    batch, input_dim, hidden_dim, output_dim, layer_num = 8, 32, 64, 16, 3
    x = jax.random.normal(xk, (batch, input_dim), jnp.float32)

    mlp = MLPPallas(input_dim, hidden_dim, output_dim, layer_num,
                    bias=True, activate_type='N', key=key)
    out = jax.block_until_ready(mlp(x))
    assert out.shape == (batch, output_dim)

    def selu(v):
        return SELU_SCALE * jnp.where(v > 0, v, SELU_ALPHA * (jnp.exp(v) - 1.0))

    # (a) Tight check vs. a reference that emulates the kernel's numerics
    #     (bf16 matmul operands, f32 accumulate, f32 SELU).
    h = x.astype(jnp.bfloat16)
    ref_emul = None
    for w, b in zip(mlp.weights_f32, mlp.biases_f32):
        y = jnp.dot(h, w.astype(jnp.bfloat16),
                    preferred_element_type=jnp.float32) + b
        y = selu(y)
        ref_emul = y
        h = y.astype(jnp.bfloat16)
    err_emul = float(jnp.max(jnp.abs(out - ref_emul)))
    assert jnp.allclose(out, ref_emul, atol=2e-3, rtol=2e-3), err_emul

    # (b) Fidelity check vs. the full-f32 PyTorch math (SELU after EVERY layer,
    #     including the last, exactly as the original module does); loose
    #     tolerance accounts for the deliberate bf16 operand cast.
    ref_f32 = x
    for w, b in zip(mlp.weights_f32, mlp.biases_f32):
        ref_f32 = selu(jnp.dot(ref_f32, w) + b)
    err_f32 = float(jnp.max(jnp.abs(out - ref_f32)))
    assert jnp.allclose(out, ref_f32, atol=1e-1, rtol=1e-1), err_f32

    print("KERNEL_OK")
</pallas_src>

<mosaic_0001>
module attributes {stable_mosaic.version = 11 : i64} {
  func.func @_mlp_fused_kernel(%arg0: i32, %arg1: memref<8x128xbf16, #tpu.memory_space<vmem>>, %arg2: memref<128x128xbf16, #tpu.memory_space<vmem>>, %arg3: memref<128x128xbf16, #tpu.memory_space<vmem>>, %arg4: memref<128x128xbf16, #tpu.memory_space<vmem>>, %arg5: memref<1x128xf32, #tpu.memory_space<vmem>>, %arg6: memref<1x128xf32, #tpu.memory_space<vmem>>, %arg7: memref<1x128xf32, #tpu.memory_space<vmem>>, %arg8: memref<8x128xf32, #tpu.memory_space<vmem>>, %arg9: memref<8x128xbf16, #tpu.memory_space<vmem>>) attributes {dimension_semantics = [#tpu.dimension_semantics<parallel>], iteration_bounds = array<i64: 1>, scalar_prefetch = 0 : i64, scratch_operands = 1 : i64, tpu.core_type = #tpu.core_type<tc>, window_params = [{transform_indices = @transform_0, window_bounds = array<i64: 8, 128>}, {pipeline_mode = #tpu.pipeline_mode<synchronous>, transform_indices = @transform_1, window_bounds = array<i64: 128, 128>}, {pipeline_mode = #tpu.pipeline_mode<synchronous>, transform_indices = @transform_2, window_bounds = array<i64: 128, 128>}, {pipeline_mode = #tpu.pipeline_mode<synchronous>, transform_indices = @transform_3, window_bounds = array<i64: 128, 128>}, {pipeline_mode = #tpu.pipeline_mode<synchronous>, transform_indices = @transform_4, window_bounds = array<i64: 1, 128>}, {pipeline_mode = #tpu.pipeline_mode<synchronous>, transform_indices = @transform_5, window_bounds = array<i64: 1, 128>}, {pipeline_mode = #tpu.pipeline_mode<synchronous>, transform_indices = @transform_6, window_bounds = array<i64: 1, 128>}, {transform_indices = @transform_7, window_bounds = array<i64: 8, 128>}]} {
    %c0 = arith.constant 0 : index
    %c0_0 = arith.constant 0 : index
    %0 = vector.load %arg1[%c0, %c0_0] : memref<8x128xbf16, #tpu.memory_space<vmem>>, vector<8x128xbf16>
    %c0_1 = arith.constant 0 : index
    %c0_2 = arith.constant 0 : index
    %1 = vector.load %arg2[%c0_1, %c0_2] : memref<128x128xbf16, #tpu.memory_space<vmem>>, vector<128x128xbf16>
    %cst = arith.constant dense<0.000000e+00> : vector<8x128xf32>
    %2 = tpu.matmul %0, %1, %cst {dimension_numbers = #tpu.dot_dimension_numbers<[1], [0], [0], [1], [0, 0, 1, 1], [], []>} : vector<8x128xbf16>, vector<128x128xbf16>, vector<8x128xf32> -> vector<8x128xf32>
    %c0_3 = arith.constant 0 : index
    %c0_4 = arith.constant 0 : index
    %3 = vector.load %arg5[%c0_3, %c0_4] : memref<1x128xf32, #tpu.memory_space<vmem>>, vector<1x128xf32>
    %4 = vector.broadcast %3 : vector<1x128xf32> to vector<8x128xf32>
    %5 = arith.addf %2, %4 : vector<8x128xf32>
    %cst_5 = arith.constant 0.000000e+00 : f32
    %6 = vector.broadcast %cst_5 : f32 to vector<8x128xf32>
    %7 = arith.cmpf ogt, %5, %6 : vector<8x128xf32>
    %8 = math.exp %5 : vector<8x128xf32>
    %cst_6 = arith.constant 1.000000e+00 : f32
    %9 = vector.broadcast %cst_6 : f32 to vector<8x128xf32>
    %10 = arith.subf %8, %9 : vector<8x128xf32>
    %cst_7 = arith.constant 1.67326319 : f32
    %11 = vector.broadcast %cst_7 : f32 to vector<8x128xf32>
    %12 = arith.mulf %11, %10 : vector<8x128xf32>
    %13 = arith.select %7, %5, %12 : vector<8x128xi1>, vector<8x128xf32>
    %cst_8 = arith.constant 1.05070102 : f32
    %14 = vector.broadcast %cst_8 : f32 to vector<8x128xf32>
    %15 = arith.mulf %14, %13 : vector<8x128xf32>
    %16 = arith.truncf %15 : vector<8x128xf32> to vector<8x128xbf16>
    %c0_9 = arith.constant 0 : index
    %c0_10 = arith.constant 0 : index
    %17 = vector.load %arg9[%c0_9, %c0_10] : memref<8x128xbf16, #tpu.memory_space<vmem>>, vector<8x128xbf16>
    tpu.vector_store %arg9[%c0_9, %c0_10], %16 {strides = array<i32>} : memref<8x128xbf16, #tpu.memory_space<vmem>>, vector<8x128xbf16>,
    %c0_11 = arith.constant 0 : index
    %c0_12 = arith.constant 0 : index
    %18 = vector.load %arg9[%c0_11, %c0_12] : memref<8x128xbf16, #tpu.memory_space<vmem>>, vector<8x128xbf16>
    %c0_13 = arith.constant 0 : index
    %c0_14 = arith.constant 0 : index
    %19 = vector.load %arg3[%c0_13, %c0_14] : memref<128x128xbf16, #tpu.memory_space<vmem>>, vector<128x128xbf16>
    %cst_15 = arith.constant dense<0.000000e+00> : vector<8x128xf32>
    %20 = tpu.matmul %18, %19, %cst_15 {dimension_numbers = #tpu.dot_dimension_numbers<[1], [0], [0], [1], [0, 0, 1, 1], [], []>} : vector<8x128xbf16>, vector<128x128xbf16>, vector<8x128xf32> -> vector<8x128xf32>
    %c0_16 = arith.constant 0 : index
    %c0_17 = arith.constant 0 : index
    %21 = vector.load %arg6[%c0_16, %c0_17] : memref<1x128xf32, #tpu.memory_space<vmem>>, vector<1x128xf32>
    %22 = vector.broadcast %21 : vector<1x128xf32> to vector<8x128xf32>
    %23 = arith.addf %20, %22 : vector<8x128xf32>
    %cst_18 = arith.constant 0.000000e+00 : f32
    %24 = vector.broadcast %cst_18 : f32 to vector<8x128xf32>
    %25 = arith.cmpf ogt, %23, %24 : vector<8x128xf32>
    %26 = math.exp %23 : vector<8x128xf32>
    %cst_19 = arith.constant 1.000000e+00 : f32
    %27 = vector.broadcast %cst_19 : f32 to vector<8x128xf32>
    %28 = arith.subf %26, %27 : vector<8x128xf32>
    %cst_20 = arith.constant 1.67326319 : f32
    %29 = vector.broadcast %cst_20 : f32 to vector<8x128xf32>
    %30 = arith.mulf %29, %28 : vector<8x128xf32>
    %31 = arith.select %25, %23, %30 : vector<8x128xi1>, vector<8x128xf32>
    %cst_21 = arith.constant 1.05070102 : f32
    %32 = vector.broadcast %cst_21 : f32 to vector<8x128xf32>
    %33 = arith.mulf %32, %31 : vector<8x128xf32>
    %34 = arith.truncf %33 : vector<8x128xf32> to vector<8x128xbf16>
    %c0_22 = arith.constant 0 : index
    %c0_23 = arith.constant 0 : index
    %35 = vector.load %arg9[%c0_22, %c0_23] : memref<8x128xbf16, #tpu.memory_space<vmem>>, vector<8x128xbf16>
    tpu.vector_store %arg9[%c0_22, %c0_23], %34 {strides = array<i32>} : memref<8x128xbf16, #tpu.memory_space<vmem>>, vector<8x128xbf16>,
    %c0_24 = arith.constant 0 : index
    %c0_25 = arith.constant 0 : index
    %36 = vector.load %arg9[%c0_24, %c0_25] : memref<8x128xbf16, #tpu.memory_space<vmem>>, vector<8x128xbf16>
    %c0_26 = arith.constant 0 : index
    %c0_27 = arith.constant 0 : index
    %37 = vector.load %arg4[%c0_26, %c0_27] : memref<128x128xbf16, #tpu.memory_space<vmem>>, vector<128x128xbf16>
    %cst_28 = arith.constant dense<0.000000e+00> : vector<8x128xf32>
    %38 = tpu.matmul %36, %37, %cst_28 {dimension_numbers = #tpu.dot_dimension_numbers<[1], [0], [0], [1], [0, 0, 1, 1], [], []>} : vector<8x128xbf16>, vector<128x128xbf16>, vector<8x128xf32> -> vector<8x128xf32>
    %c0_29 = arith.constant 0 : index
    %c0_30 = arith.constant 0 : index
    %39 = vector.load %arg7[%c0_29, %c0_30] : memref<1x128xf32, #tpu.memory_space<vmem>>, vector<1x128xf32>
    %40 = vector.broadcast %39 : vector<1x128xf32> to vector<8x128xf32>
    %41 = arith.addf %38, %40 : vector<8x128xf32>
    %cst_31 = arith.constant 0.000000e+00 : f32
    %42 = vector.broadcast %cst_31 : f32 to vector<8x128xf32>
    %43 = arith.cmpf ogt, %41, %42 : vector<8x128xf32>
    %44 = math.exp %41 : vector<8x128xf32>
    %cst_32 = arith.constant 1.000000e+00 : f32
    %45 = vector.broadcast %cst_32 : f32 to vector<8x128xf32>
    %46 = arith.subf %44, %45 : vector<8x128xf32>
    %cst_33 = arith.constant 1.67326319 : f32
    %47 = vector.broadcast %cst_33 : f32 to vector<8x128xf32>
    %48 = arith.mulf %47, %46 : vector<8x128xf32>
    %49 = arith.select %43, %41, %48 : vector<8x128xi1>, vector<8x128xf32>
    %cst_34 = arith.constant 1.05070102 : f32
    %50 = vector.broadcast %cst_34 : f32 to vector<8x128xf32>
    %51 = arith.mulf %50, %49 : vector<8x128xf32>
    %c0_35 = arith.constant 0 : index
    %c0_36 = arith.constant 0 : index
    %52 = vector.load %arg8[%c0_35, %c0_36] : memref<8x128xf32, #tpu.memory_space<vmem>>, vector<8x128xf32>
    tpu.vector_store %arg8[%c0_35, %c0_36], %51 {strides = array<i32>} : memref<8x128xf32, #tpu.memory_space<vmem>>, vector<8x128xf32>,
    return
  }
  func.func @transform_0(%arg0: i32) -> (i32, i32) {
    %c0_i32 = arith.constant 0 : i32
    %c0_i32_0 = arith.constant 0 : i32
    return %arg0, %c0_i32 : i32, i32
  }
  func.func @transform_1(%arg0: i32) -> (i32, i32) {
    %c0_i32 = arith.constant 0 : i32
    %c0_i32_0 = arith.constant 0 : i32
    %c0_i32_1 = arith.constant 0 : i32
    return %c0_i32, %c0_i32_0 : i32, i32
  }
  func.func @transform_2(%arg0: i32) -> (i32, i32) {
    %c0_i32 = arith.constant 0 : i32
    %c0_i32_0 = arith.constant 0 : i32
    %c0_i32_1 = arith.constant 0 : i32
    return %c0_i32, %c0_i32_0 : i32, i32
  }
  func.func @transform_3(%arg0: i32) -> (i32, i32) {
    %c0_i32 = arith.constant 0 : i32
    %c0_i32_0 = arith.constant 0 : i32
    %c0_i32_1 = arith.constant 0 : i32
    return %c0_i32, %c0_i32_0 : i32, i32
  }
  func.func @transform_4(%arg0: i32) -> (i32, i32) {
    %c0_i32 = arith.constant 0 : i32
    %c0_i32_0 = arith.constant 0 : i32
    %c0_i32_1 = arith.constant 0 : i32
    return %c0_i32, %c0_i32_0 : i32, i32
  }
  func.func @transform_5(%arg0: i32) -> (i32, i32) {
    %c0_i32 = arith.constant 0 : i32
    %c0_i32_0 = arith.constant 0 : i32
    %c0_i32_1 = arith.constant 0 : i32
    return %c0_i32, %c0_i32_0 : i32, i32
  }
  func.func @transform_6(%arg0: i32) -> (i32, i32) {
    %c0_i32 = arith.constant 0 : i32
    %c0_i32_0 = arith.constant 0 : i32
    %c0_i32_1 = arith.constant 0 : i32
    return %c0_i32, %c0_i32_0 : i32, i32
  }
  func.func @transform_7(%arg0: i32) -> (i32, i32) {
    %c0_i32 = arith.constant 0 : i32
    %c0_i32_0 = arith.constant 0 : i32
    return %arg0, %c0_i32 : i32, i32
  }
}

</mosaic_0001>

<bundles_post_ra>
// kernel: tpu_custom_call.1
= control target key start
LH: loop header
LB: loop body
LE: loop exit
PB: predicated region body
PF: predicated region fallthrough
CT: control target
= control target key end

     0   :  { %12 = vsyncpa [#allocation4], 0  ;;  %s717_s0 = inlined_call_operand.hbm [shape: bf16[8,128], index: 0, kind: input, shape index: {}]   ;;  %s718_s1 = inlined_call_operand.hbm [shape: bf16[128,128], index: 1, kind: input, shape index: {}]   ;;  %s719_s2 = inlined_call_operand.hbm [shape: bf16[128,128], index: 2, kind: input, shape index: {}]   ;;  %s720_s3 = inlined_call_operand.hbm [shape: bf16[128,128], index: 3, kind: input, shape index: {}]   ;;  %s721_s4 = inlined_call_operand.vmem [shape: f32[1,128], index: 4, kind: input, shape index: {}]   ;;  %s722_s5 = inlined_call_operand.vmem [shape: f32[1,128], index: 5, kind: input, shape index: {}]   ;;  %s723_s6 = inlined_call_operand.vmem [shape: f32[1,128], index: 6, kind: input, shape index: {}]   ;;  %s724_s7 = inlined_call_operand.hbm [shape: f32[8,128], index: 7, kind: output, shape index: {}]  }
   0x1   :  { %13 = vsyncpa [#allocation7], 0 }
   0x2   :  { %14 = vsyncpa [#allocation10], 0  ;;  %s31_s26 = sshll.u32 %s718_s1, 4  ;;  %s32_s26 = int_to_ptr.hbm [resolvable:$true] %s31_s26 }
   0x3   :  { %15 = vsyncpa [#allocation5], 0  ;;  %s646_s27 = smov [#allocation6]   ;;  %s21_s8 = sshll.u32 %s717_s0, 4  ;;  %s22_s8 = int_to_ptr.hbm [resolvable:$true] %s21_s8 }
   0x4   :  { %s33_s28 = sshll.u32 %s646_s27, 4  ;;  %s647_s9 = smov 64   ;;  %s34_s28 = int_to_ptr.vmem [resolvable:$true] %s33_s28 }
   0x5   :  { %s648_s10 = smov 4   ;;  %s649_s11 = smov [#allocation3]  }
   0x6   :  { %39 = dma.hbm_to_vmem [thread:$0]  %s32_s26, 1024, %s34_s28, [#allocation7], %s647_s9, %s647_s9, %s648_s10  }
   0x7   :  { %s23_s12 = sshll.u32 %s649_s11, 4  ;;  %s44_s15 = sshll.u32 %s719_s2, 4  ;;  %s24_s12 = int_to_ptr.vmem [resolvable:$true] %s23_s12  ;;  %s45_s15 = int_to_ptr.hbm [resolvable:$true] %s44_s15 }
   0x8   :  { %26 = dma.hbm_to_vmem [thread:$0]  %s22_s8, 64, %s24_s12, [#allocation4]  }
   0x9   :  { %s57_s17 = sshll.u32 %s720_s3, 4  ;;  %s650_s18 = smov [#allocation8]   ;;  %s58_s17 = int_to_ptr.hbm [resolvable:$true] %s57_s17 }
   0xa   :  { %s46_s19 = sshll.u32 %s650_s18, 4  ;;  %s651_s0 = smov [#allocation9]   ;;  %s47_s19 = int_to_ptr.vmem [resolvable:$true] %s46_s19 }
   0xb   :  { %52 = dma.hbm_to_vmem [thread:$0]  %s45_s15, 1024, %s47_s19, [#allocation7], %s647_s9, %s647_s9, %s648_s10  }
   0xc   :  { %s59_s20 = sshll.u32 %s651_s0, 4  ;;  %s60_s20 = int_to_ptr.vmem [resolvable:$true] %s59_s20 }
   0xd   :  { %65 = dma.hbm_to_vmem [thread:$0]  %s58_s17, 1024, %s60_s20, [#allocation10], %s647_s9, %s647_s9, %s648_s10  }
   0xe   :  { %638 = dma.done.wait [#allocation4], 64  }
   0xf   :  { %639 = vsyncadd [#allocation4], 4294967232 }
  0x10   :  { %640 = dma.done.wait [#allocation7], 2048  }
  0x11   :  { %641 = vsyncadd [#allocation7], 4294965248 }
  0x12   :  { %642 = dma.done.wait [#allocation10], 1024  }
  0x13   :  { %643 = vsyncadd [#allocation10], 4294966272  ;;  %v485_v0 = vld [vmem:[#allocation6 + $0x38] sm:$0xff]  ;;  %v484_v1 = vld [vmem:[#allocation6 + $0x30] sm:$0xff]  ;;  %s367_s27 = sshll.u32 %s724_s7, 4  ;;  %s368_s27 = int_to_ptr.hbm [resolvable:$true] %s367_s27 }
  0x14   :  { %157 = vmatpush.bf16.msra.mxu0 %v485_v0  ;;  %v493_v2 = vld [vmem:[#allocation8 + $0x38] sm:$0xff]  ;;  %v483_v3 = vld [vmem:[#allocation6 + $0x28] sm:$0xff]  ;;  %v482_v4 = vld [vmem:[#allocation6 + $0x20] sm:$0xff] }
  0x15   :  { %248 = vmatpush.bf16.msra.mxu1 %v493_v2  ;;  %v481_v5 = vld [vmem:[#allocation6 + $0x18] sm:$0xff]  ;;  %v480_v6 = vld [vmem:[#allocation6 + $0x10] sm:$0xff]  ;;  %v479_v7 = vld [vmem:[#allocation6 + $0x8] sm:$0xff] }
  0x16   :  { %v478_v8 = vld [vmem:[#allocation6] sm:$0xff]  ;;  %v88_v9 = vld [vmem:[#allocation3] sm:$0xf]  ;;  %v492_v10 = vld [vmem:[#allocation8 + $0x30] sm:$0xff] }
  0x17   :  { %v491_v11 = vld [vmem:[#allocation8 + $0x28] sm:$0xff]  ;;  %v490_v12 = vld [vmem:[#allocation8 + $0x20] sm:$0xff]  ;;  %v489_v13 = vld [vmem:[#allocation8 + $0x18] sm:$0xff] }
  0x18   :  { %158 = vmatpush.bf16.msra.mxu0 %v484_v1  ;;  %v488_v14 = vld [vmem:[#allocation8 + $0x10] sm:$0xff]  ;;  %v487_v15 = vld [vmem:[#allocation8 + $0x8] sm:$0xff]  ;;  %v486_v16 = vld [vmem:[#allocation8] sm:$0xff] }
  0x19   :  { %249 = vmatpush.bf16.msra.mxu1 %v492_v10  ;;  %v509_v17 = vld [vmem:[%s721_s4] ss:$0 sm:$0xff]  ;;  %v500_v30 = vld [vmem:[#allocation9 + $0x30] sm:$0xff]  ;;  %v499_v31 = vld [vmem:[#allocation9 + $0x28] sm:$0xff] }
  0x1a   :  { %v501_v18 = vld [vmem:[#allocation9 + $0x38] sm:$0xff]  ;;  %v498_v32 = vld [vmem:[#allocation9 + $0x20] sm:$0xff]  ;;  %v496_v34 = vld [vmem:[#allocation9 + $0x10] sm:$0xff] }
  0x1b   :  { %339 = vmatpush.bf16.msra.mxu2 %v501_v18  ;;  %v497_v33 = vld [vmem:[#allocation9 + $0x18] sm:$0xff]  ;;  %v495_v35 = vld [vmem:[#allocation9 + $0x8] sm:$0xff]  ;;  %v494_v36 = vld [vmem:[#allocation9] sm:$0xff] }
  0x1c   :  { %159 = vmatpush.bf16.msra.mxu0 %v483_v3  ;;  %v510_v37 = vld [vmem:[%s722_s5] ss:$0 sm:$0xff]  ;;  %s652_s5 = smov [#allocation11]  }
  0x1d   :  { %250 = vmatpush.bf16.msra.mxu1 %v491_v11  ;;  %v511_v49 = vld [vmem:[%s723_s6] ss:$0 sm:$0xff]  ;;  %s365_s24 = sshll.u32 %s652_s5, 4  ;;  %s366_s24 = int_to_ptr.vmem [resolvable:$true] %s365_s24 }
  0x1f   :  { %340 = vmatpush.bf16.msra.mxu2 %v500_v30 }
  0x20   :  { %160 = vmatpush.bf16.msra.mxu0 %v482_v4 }
  0x21   :  { %251 = vmatpush.bf16.msra.mxu1 %v490_v12 }
  0x23   :  { %341 = vmatpush.bf16.msra.mxu2 %v499_v31 }
  0x24   :  { %161 = vmatpush.bf16.msra.mxu0 %v481_v5 }
  0x25   :  { %252 = vmatpush.bf16.msra.mxu1 %v489_v13 }
  0x27   :  { %342 = vmatpush.bf16.msra.mxu2 %v498_v32 }
  0x28   :  { %162 = vmatpush.bf16.msra.mxu0 %v480_v6 }
  0x29   :  { %253 = vmatpush.bf16.msra.mxu1 %v488_v14 }
  0x2b   :  { %343 = vmatpush.bf16.msra.mxu2 %v497_v33 }
  0x2c   :  { %163 = vmatpush.bf16.msra.mxu0 %v479_v7 }
  0x2d   :  { %254 = vmatpush.bf16.msra.mxu1 %v487_v15 }
  0x2f   :  { %344 = vmatpush.bf16.msra.mxu2 %v496_v34 }
  0x30   :  { %164 = vmatpush.bf16.msra.mxu0 %v478_v8 }
  0x31   :  { %255 = vmatpush.bf16.msra.mxu1 %v486_v16 }
  0x33   :  { %165 = vmatmul.bf16.vlgmr.msra.gmra.mxu0 %v88_v9  ;;  %345 = vmatpush.bf16.msra.mxu2 %v495_v35 }
  0x37   :  { %346 = vmatpush.bf16.msra.mxu2 %v494_v36 }
  0xb0   :  { %v166_v19 = vpop.f32.mrf.mxu0 }
  0xb1   :  { %v167_v20 = vadd.f32 %v509_v17, %v166_v19 }
  0xb3   :  { %v171_v21 = vmul.f32 1.442695, %v167_v20  ;;  %vm170_vm0 = vcmp.gt.f32.partialorder %v167_v20, 0.0 }
  0xb5   :  { %512 = vpow2.f32 %v171_v21 }
  0xb8   :  { %v168_v22 = vpop.f32.mrf.mxu0 }
  0xbb   :  { %v513_v23 = vpop.eup %512 }
  0xbc   :  { %v411_v24 = vadd.f32 -1.0, %v513_v23 }
  0xbe   :  { %v174_v25 = vmul.f32 1.6732632, %v411_v24 }
  0xc0   :  { %v175_v26 = vsel %vm170_vm0, %v167_v20, %v174_v25 }
  0xc1   :  { %v176_v27 = vmul.f32 1.050701, %v175_v26 }
  0xc3   :  { %v177_v28 = vpack.c.bf16 %v176_v27, %v176_v27 }
  0xc5   :  { %178 = vst [vmem:[#allocation2] sm:$0xf] %v177_v28 }
  0xcc   :  { %v179_v29 = vld [vmem:[#allocation2] sm:$0xf] }
  0xcd   :  { %256 = vmatmul.bf16.vlgmr.msra.gmra.mxu1 %v179_v29 }
 0x14a   :  { %v257_v38 = vpop.f32.mrf.mxu1 }
 0x14b   :  { %v258_v39 = vadd.f32 %v510_v37, %v257_v38 }
 0x14d   :  { %v262_v40 = vmul.f32 1.442695, %v258_v39  ;;  %vm261_vm1 = vcmp.gt.f32.partialorder %v258_v39, 0.0 }
 0x14f   :  { %514 = vpow2.f32 %v262_v40 }
 0x152   :  { %v259_v41 = vpop.f32.mrf.mxu1 }
 0x155   :  { %v515_v42 = vpop.eup %514 }
 0x156   :  { %v444_v43 = vadd.f32 -1.0, %v515_v42 }
 0x158   :  { %v265_v44 = vmul.f32 1.6732632, %v444_v43 }
 0x15a   :  { %v266_v45 = vsel %vm261_vm1, %v258_v39, %v265_v44 }
 0x15b   :  { %v267_v46 = vmul.f32 1.050701, %v266_v45 }
 0x15d   :  { %v268_v47 = vpack.c.bf16 %v267_v46, %v267_v46 }
 0x15f   :  { %269 = vst [vmem:[#allocation2] sm:$0xf] %v268_v47 }
 0x166   :  { %v270_v48 = vld [vmem:[#allocation2] sm:$0xf] }
 0x167   :  { %347 = vmatmul.bf16.vlgmr.msra.gmra.mxu2 %v270_v48 }
 0x1ea   :  { %v348_v50 = vpop.f32.mrf.mxu2 }
 0x1eb   :  { %v349_v51 = vadd.f32 %v511_v49, %v348_v50 }
 0x1ed   :  { %v353_v52 = vmul.f32 1.442695, %v349_v51  ;;  %vm352_vm2 = vcmp.gt.f32.partialorder %v349_v51, 0.0 }
 0x1ef   :  { %516 = vpow2.f32 %v353_v52 }
 0x1f2   :  { %v350_v53 = vpop.f32.mrf.mxu2 }
 0x1f5   :  { %v517_v54 = vpop.eup %516 }
 0x1f6   :  { %v477_v55 = vadd.f32 -1.0, %v517_v54 }
 0x1f8   :  { %v356_v56 = vmul.f32 1.6732632, %v477_v55 }
 0x1fa   :  { %v357_v57 = vsel %vm352_vm2, %v349_v51, %v356_v56 }
 0x1fb   :  { %v358_v58 = vmul.f32 1.050701, %v357_v57 }
 0x1fd   :  { %359 = vst [vmem:[#allocation11] sm:$0xff] %v358_v58 }
 0x1fe   :  { %370 = dma.vmem_to_hbm [thread:$0]  %s366_s24, 128, %s368_s27, [#allocation5]  }
 0x1ff   :  { %644 = dma.done.wait [#allocation5], 128  }
 0x200   :  { %645 = vsyncadd [#allocation5], 4294967168 }
 0x201   :  { %375 = vsyncpa [#allocation4], 1 }
 0x202   :  { %376 = vsyncpa [#allocation7], 1 }
 0x203   :  { %377 = vsyncpa [#allocation10], 1 }
 0x204   :  { %378 = vsyncpa [#allocation5], 1 }

</bundles_post_ra>
